<compile_context>
chip_gen: v7x
topology: tpu7x:2x2x1
jax: 0.10.0
libtpu: 0.0.40
codegen_flags: <defaults>
</compile_context>

<pallas_src>
import functools

import jax
import jax.numpy as jnp
from jax import lax
from jax.experimental import pallas as pl
from jax.experimental.pallas import tpu as pltpu


_LANE = 128
_SUBLANE = 8
_NEG_INF = -1e30


def _cdiv(a, b):
    return (a + b - 1) // b


def _round_up(x, m):
    return _cdiv(x, m) * m


def _vmem_budget_bytes():
    """Generation-aware scoped-VMEM budget.

    <= ~48 MiB on v7x (64 MiB per-TC VMEM), up to 96 MiB on 128 MiB chips.
    """
    cap = 64 * 1024 * 1024  # conservative default (v7x per-TC)
    try:
        info = pltpu.get_tpu_info()
        cap = int(getattr(info, "vmem_capacity_bytes", cap))
    except Exception:
        pass
    return int(min(96 * 1024 * 1024, (cap * 3) // 4))


def _pick_tm(n, tm_max=512):
    """Row tile: avoid padding overshoot; split into >=2 tiles for big batches
    so the 'parallel' i axis can shard across v7x's 2 TensorCores."""
    n8 = _round_up(max(n, _SUBLANE), _SUBLANE)
    tiles = _cdiv(n8, tm_max)
    if tiles == 1 and n8 >= 2 * _LANE:
        tiles = 2
    tm = _round_up(_cdiv(n8, tiles), _SUBLANE)
    return tm, tm * tiles


def _pick_tk(f, d, out_cols, budget, tm_ref=512):
    """K tile: prefer a single resident-W step when it fits the VMEM budget."""

    def vmem_use(tk):
        w = 2 * tk * d * 2              # double-buffered bf16 W tile
        x = 2 * tm_ref * tk * 2         # double-buffered bf16 X tile
        o = 2 * tm_ref * out_cols * 4   # double-buffered f32 output tile
        acc = tm_ref * d * 4            # f32 accumulator scratch
        return w + x + o + acc + (2 << 20)

    tk = _round_up(f, _LANE)
    while tk > _LANE and vmem_use(tk) > budget:
        tk = _round_up(max(_LANE, tk // 2), _LANE)
    f_pad = _round_up(f, tk)
    return tk, f_pad


# ----------------------------------------------------------------------------
# Kernel 1: backbone — tiled linear embedding  emb = X @ W + b
#   grid = (N/tm, F/tk), K (F) reduction last, f32 accumulator in VMEM scratch.
#   With resident W (tk == F) the grid degenerates to (N/tm, 1).
# ----------------------------------------------------------------------------
def _embed_kernel(x_ref, w_ref, b_ref, o_ref, acc_ref):
    k = pl.program_id(1)

    @pl.when(k == 0)
    def _():
        acc_ref[...] = jnp.zeros_like(acc_ref)

    acc_ref[...] += jnp.dot(x_ref[...], w_ref[...],
                            preferred_element_type=jnp.float32)

    @pl.when(k == pl.num_programs(1) - 1)
    def _():
        o_ref[...] = acc_ref[...] + b_ref[...]


def _embed(x_flat, w_bf16, b_f32, *, tk, f_pad, budget):
    n, f = x_flat.shape
    d = w_bf16.shape[1]
    tm, n_pad = _pick_tm(n)

    # single fused cast+pad pass (no zeros-buffer materialization)
    x_p = jnp.pad(x_flat.astype(jnp.bfloat16),
                  ((0, n_pad - n), (0, f_pad - f)))

    out = pl.pallas_call(
        _embed_kernel,
        out_shape=jax.ShapeDtypeStruct((n_pad, d), jnp.float32),
        grid_spec=pltpu.PrefetchScalarGridSpec(
            num_scalar_prefetch=0,
            grid=(n_pad // tm, f_pad // tk),
            in_specs=[
                pl.BlockSpec((tm, tk), lambda i, k: (i, k)),
                pl.BlockSpec((tk, d), lambda i, k: (k, 0)),
                pl.BlockSpec((1, d), lambda i, k: (0, 0)),
            ],
            out_specs=pl.BlockSpec((tm, d), lambda i, k: (i, 0)),
            scratch_shapes=[pltpu.VMEM((tm, d), jnp.float32)],
        ),
        compiler_params=pltpu.CompilerParams(
            dimension_semantics=("parallel", "arbitrary"),
            vmem_limit_bytes=budget,
        ),
    )(x_p, w_bf16, b_f32)
    return out[:n]


# ----------------------------------------------------------------------------
# Kernel 2 (fused query path): embed matmul + l2 distance to resident
#   prototypes + log_softmax, all inside the K-finalize epilogue.  Prototypes
#   are pre-transposed (D, p_pad); output tile is lane-dense (tm, 128).
# ----------------------------------------------------------------------------
def _fused_query_kernel(x_ref, w_ref, b_ref, pt_ref, psq_ref, o_ref, acc_ref,
                        *, n_way, use_softmax):
    k = pl.program_id(1)

    @pl.when(k == 0)
    def _():
        acc_ref[...] = jnp.zeros_like(acc_ref)

    acc_ref[...] += jnp.dot(x_ref[...], w_ref[...],
                            preferred_element_type=jnp.float32)

    @pl.when(k == pl.num_programs(1) - 1)
    def _():
        # use the same bf16 q for both the cross matmul and the squared norm
        # (self-consistent distances; review correctness note).
        q_bf = (acc_ref[...] + b_ref[...]).astype(jnp.bfloat16)     # (tm, D)
        q32 = q_bf.astype(jnp.float32)
        q_sq = jnp.sum(q32 * q32, axis=-1, keepdims=True)           # (tm, 1)
        cross = jnp.dot(q_bf, pt_ref[...],
                        preferred_element_type=jnp.float32)         # (tm, P)
        d2 = jnp.maximum(q_sq + psq_ref[...] - 2.0 * cross, 0.0)
        # torch.cdist distances, negated so the nearest prototype wins
        logits = -jnp.sqrt(d2)
        col = lax.broadcasted_iota(jnp.int32, logits.shape, 1)
        logits = jnp.where(col < n_way, logits, _NEG_INF)           # mask pad
        if use_softmax:
            m = jnp.max(logits, axis=-1, keepdims=True)
            lse = jnp.log(jnp.sum(jnp.exp(logits - m), axis=-1,
                                  keepdims=True)) + m
            logits = logits - lse
        o_ref[...] = logits


def _embed_and_classify(x_flat, w_bf16, b_f32, pt_bf16, psq_f32, n_way,
                        use_softmax, *, tk, f_pad, budget):
    n, f = x_flat.shape
    d = w_bf16.shape[1]
    p_pad = pt_bf16.shape[1]
    tm, n_pad = _pick_tm(n)

    x_p = jnp.pad(x_flat.astype(jnp.bfloat16),
                  ((0, n_pad - n), (0, f_pad - f)))

    kernel = functools.partial(_fused_query_kernel, n_way=n_way,
                               use_softmax=use_softmax)
    out = pl.pallas_call(
        kernel,
        out_shape=jax.ShapeDtypeStruct((n_pad, p_pad), jnp.float32),
        grid_spec=pltpu.PrefetchScalarGridSpec(
            num_scalar_prefetch=0,
            grid=(n_pad // tm, f_pad // tk),
            in_specs=[
                pl.BlockSpec((tm, tk), lambda i, k: (i, k)),
                pl.BlockSpec((tk, d), lambda i, k: (k, 0)),
                pl.BlockSpec((1, d), lambda i, k: (0, 0)),
                pl.BlockSpec((d, p_pad), lambda i, k: (0, 0)),
                pl.BlockSpec((1, p_pad), lambda i, k: (0, 0)),
            ],
            out_specs=pl.BlockSpec((tm, p_pad), lambda i, k: (i, 0)),
            scratch_shapes=[pltpu.VMEM((tm, d), jnp.float32)],
        ),
        compiler_params=pltpu.CompilerParams(
            dimension_semantics=("parallel", "arbitrary"),
            vmem_limit_bytes=budget,
        ),
    )(x_p, w_bf16, b_f32, pt_bf16, psq_f32)
    return out[:n, :n_way]


# ----------------------------------------------------------------------------
# FewShotClassifier (JAX/Pallas version)
# ----------------------------------------------------------------------------
class FewShotClassifier:
    def __init__(self, w, b, use_softmax=True):
        w = jnp.asarray(w, jnp.float32)
        f, d = w.shape
        self.embedding_dimension = d
        self.backbone_output_shape = (d,)
        self.use_softmax = use_softmax
        self._feat_dim = f

        self._budget = _vmem_budget_bytes()
        # K tile chosen once (resident W when it fits); W packed to bf16 once.
        self._tk, self._f_pad = _pick_tk(f, d, max(d, _LANE), self._budget)
        self._w_bf16 = jnp.pad(w.astype(jnp.bfloat16),
                               ((0, self._f_pad - f), (0, 0)))
        self._b_f32 = jnp.asarray(b, jnp.float32).reshape(1, d)

        self.prototypes = None
        self.support_embeddings = None
        self.support_labels = None
        self.n_way = None
        self._pt_bf16 = None     # (D, p_pad) pre-transposed bf16 prototypes
        self._proto_sq = None    # (1, p_pad) f32 squared norms (from bf16)

    def backbone(self, images_nchw):
        n = images_nchw.shape[0]
        x_flat = images_nchw.reshape(n, -1)
        return _embed(x_flat, self._w_bf16, self._b_f32,
                      tk=self._tk, f_pad=self._f_pad, budget=self._budget)

    def process_support_set(self, support_images, support_labels, n_way=None):
        self.store_support_set_data(support_images, support_labels, n_way)

    def store_support_set_data(self, support_images, support_labels, n_way=None):
        if n_way is None:
            # Fallback forces a device->host sync; prefer passing n_way statically.
            n_way = int(jnp.max(support_labels)) + 1
        self.n_way = n_way
        self.support_labels = support_labels
        self.support_embeddings = self.backbone(support_images)

        # compute_prototypes: per-class mean.  The tiny (n_way,S)x(S,D) matmul
        # is far below one MXU pass -> plain XLA (no pallas_call overhead).
        onehot = (support_labels[:, None] == jnp.arange(n_way)[None, :])
        onehot = onehot.astype(jnp.float32)                          # (S, n_way)
        counts = jnp.maximum(jnp.sum(onehot, axis=0, keepdims=True), 1.0)
        weights = (onehot / counts).T                                # (n_way, S)
        self.prototypes = weights @ self.support_embeddings          # (n_way, D)

        # Pack head-side constants once: pre-transposed bf16 prototypes padded
        # to a lane-dense 128-wide head, and their squared norms (from the same
        # bf16 values the kernel uses, for self-consistent distances).
        d = self.embedding_dimension
        p_pad = _round_up(max(n_way, _LANE), _LANE)
        protos_bf = self.prototypes.astype(jnp.bfloat16)             # (n_way, D)
        self._pt_bf16 = jnp.pad(protos_bf.T, ((0, 0), (0, p_pad - n_way)))
        psq = jnp.sum(protos_bf.astype(jnp.float32) ** 2, axis=-1)   # (n_way,)
        self._proto_sq = jnp.pad(psq, (0, p_pad - n_way)).reshape(1, p_pad)

    def forward(self, query_images):
        # Concrete forward for the abstract spec: fused backbone embed +
        # (negated) l2 distance to prototypes + log_softmax (if use_softmax).
        n = query_images.shape[0]
        x_flat = query_images.reshape(n, -1)
        return _embed_and_classify(x_flat, self._w_bf16, self._b_f32,
                                   self._pt_bf16, self._proto_sq,
                                   self.n_way, self.use_softmax,
                                   tk=self._tk, f_pad=self._f_pad,
                                   budget=self._budget)

    @staticmethod
    def is_transductive():
        return False


# ----------------------------------------------------------------------------
# Pure-JAX reference (f32) for a correctness check.
# ----------------------------------------------------------------------------
def _reference_forward(query_images, support_images, support_labels, w, b,
                       n_way, use_softmax):
    def emb(imgs):
        x = imgs.reshape(imgs.shape[0], -1).astype(jnp.float32)
        return x @ w + b.reshape(1, -1)

    s_emb = emb(support_images)
    q_emb = emb(query_images)
    onehot = (support_labels[:, None] == jnp.arange(n_way)[None, :]).astype(jnp.float32)
    protos = (onehot / jnp.sum(onehot, axis=0, keepdims=True)).T @ s_emb
    d2 = (jnp.sum(q_emb ** 2, -1, keepdims=True)
          + jnp.sum(protos ** 2, -1)[None, :]
          - 2.0 * q_emb @ protos.T)
    logits = -jnp.sqrt(jnp.maximum(d2, 0.0))
    return jax.nn.log_softmax(logits, -1) if use_softmax else logits


if __name__ == "__main__":
    key = jax.random.PRNGKey(0)
    k_w, k_b, k_sup, k_qry = jax.random.split(key, 4)

    # small shapes: NCHW images (N, 3, 16, 16), embedding dim 128
    C, H, W = 3, 16, 16
    FLAT = C * H * W
    D_EMB = 128
    N_WAY, N_SHOT = 4, 2
    N_SUPPORT = N_WAY * N_SHOT
    N_QUERY = 8

    w = jax.random.normal(k_w, (FLAT, D_EMB), jnp.float32) * 0.05
    b = jax.random.normal(k_b, (1, D_EMB), jnp.float32) * 0.01

    support_images = jax.random.normal(k_sup, (N_SUPPORT, C, H, W), jnp.float32)
    support_labels = jnp.array([0, 1, 2, 3, 0, 1, 2, 3], dtype=jnp.int32)
    query_images = jax.random.normal(k_qry, (N_QUERY, C, H, W), jnp.float32)

    clf = FewShotClassifier(w, b, use_softmax=True)
    clf.process_support_set(support_images, support_labels, n_way=N_WAY)
    logits = clf.forward(query_images)
    logits = jax.block_until_ready(logits)

    assert logits.shape == (N_QUERY, N_WAY)
    assert bool(jnp.all(jnp.isfinite(logits)))
    # rows are valid log-probabilities
    row_sums = jnp.sum(jnp.exp(logits), axis=-1)
    assert bool(jnp.allclose(row_sums, 1.0, atol=1e-3))
    # match the f32 reference (bf16 matmuls -> loose tolerance)
    ref = _reference_forward(query_images, support_images, support_labels,
                             w, b, N_WAY, use_softmax=True)
    assert bool(jnp.allclose(logits, ref, atol=0.15))

    print("KERNEL_OK")
</pallas_src>

<mosaic_0001>
module attributes {stable_mosaic.version = 11 : i64} {
  func.func @_embed_kernel(%arg0: i32, %arg1: i32, %arg2: memref<8x768xbf16, #tpu.memory_space<vmem>>, %arg3: memref<768x128xbf16, #tpu.memory_space<vmem>>, %arg4: memref<1x128xf32, #tpu.memory_space<vmem>>, %arg5: memref<8x128xf32, #tpu.memory_space<vmem>>, %arg6: memref<8x128xf32, #tpu.memory_space<vmem>>) attributes {dimension_semantics = [#tpu.dimension_semantics<parallel>, #tpu.dimension_semantics<arbitrary>], iteration_bounds = array<i64: 1, 1>, scalar_prefetch = 0 : i64, scratch_operands = 1 : i64, tpu.core_type = #tpu.core_type<tc>, window_params = [{transform_indices = @transform_0, window_bounds = array<i64: 8, 768>}, {transform_indices = @transform_1, window_bounds = array<i64: 768, 128>}, {pipeline_mode = #tpu.pipeline_mode<synchronous>, transform_indices = @transform_2, window_bounds = array<i64: 1, 128>}, {transform_indices = @transform_3, window_bounds = array<i64: 8, 128>}]} {
    %c0_i32 = arith.constant 0 : i32
    %0 = arith.cmpi eq, %arg1, %c0_i32 : i32
    %1 = arith.extui %0 : i1 to i32
    %c0_i32_0 = arith.constant 0 : i32
    %2 = arith.cmpi ne, %1, %c0_i32_0 : i32
    scf.if %2 {
      %cst_10 = arith.constant 0.000000e+00 : f32
      %12 = vector.broadcast %cst_10 : f32 to vector<8x128xf32>
      %c0_11 = arith.constant 0 : index
      %c0_12 = arith.constant 0 : index
      %13 = vector.load %arg6[%c0_11, %c0_12] : memref<8x128xf32, #tpu.memory_space<vmem>>, vector<8x128xf32>
      tpu.vector_store %arg6[%c0_11, %c0_12], %12 {strides = array<i32>} : memref<8x128xf32, #tpu.memory_space<vmem>>, vector<8x128xf32>,
    } else {
    }
    %c0 = arith.constant 0 : index
    %c0_1 = arith.constant 0 : index
    %3 = vector.load %arg6[%c0, %c0_1] : memref<8x128xf32, #tpu.memory_space<vmem>>, vector<8x128xf32>
    %c0_2 = arith.constant 0 : index
    %c0_3 = arith.constant 0 : index
    %4 = vector.load %arg2[%c0_2, %c0_3] : memref<8x768xbf16, #tpu.memory_space<vmem>>, vector<8x768xbf16>
    %c0_4 = arith.constant 0 : index
    %c0_5 = arith.constant 0 : index
    %5 = vector.load %arg3[%c0_4, %c0_5] : memref<768x128xbf16, #tpu.memory_space<vmem>>, vector<768x128xbf16>
    %cst = arith.constant dense<0.000000e+00> : vector<8x128xf32>
    %6 = tpu.matmul %4, %5, %cst {dimension_numbers = #tpu.dot_dimension_numbers<[1], [0], [0], [1], [0, 0, 1, 1], [], []>} : vector<8x768xbf16>, vector<768x128xbf16>, vector<8x128xf32> -> vector<8x128xf32>
    %7 = arith.addf %3, %6 : vector<8x128xf32>
    %c0_6 = arith.constant 0 : index
    %c0_7 = arith.constant 0 : index
    %8 = vector.load %arg6[%c0_6, %c0_7] : memref<8x128xf32, #tpu.memory_space<vmem>>, vector<8x128xf32>
    tpu.vector_store %arg6[%c0_6, %c0_7], %7 {strides = array<i32>} : memref<8x128xf32, #tpu.memory_space<vmem>>, vector<8x128xf32>,
    %c0_i32_8 = arith.constant 0 : i32
    %9 = arith.cmpi eq, %arg1, %c0_i32_8 : i32
    %10 = arith.extui %9 : i1 to i32
    %c0_i32_9 = arith.constant 0 : i32
    %11 = arith.cmpi ne, %10, %c0_i32_9 : i32
    scf.if %11 {
      %c0_10 = arith.constant 0 : index
      %c0_11 = arith.constant 0 : index
      %12 = vector.load %arg6[%c0_10, %c0_11] : memref<8x128xf32, #tpu.memory_space<vmem>>, vector<8x128xf32>
      %c0_12 = arith.constant 0 : index
      %c0_13 = arith.constant 0 : index
      %13 = vector.load %arg4[%c0_12, %c0_13] : memref<1x128xf32, #tpu.memory_space<vmem>>, vector<1x128xf32>
      %14 = vector.broadcast %13 : vector<1x128xf32> to vector<8x128xf32>
      %15 = arith.addf %12, %14 : vector<8x128xf32>
      %c0_14 = arith.constant 0 : index
      %c0_15 = arith.constant 0 : index
      %16 = vector.load %arg5[%c0_14, %c0_15] : memref<8x128xf32, #tpu.memory_space<vmem>>, vector<8x128xf32>
      tpu.vector_store %arg5[%c0_14, %c0_15], %15 {strides = array<i32>} : memref<8x128xf32, #tpu.memory_space<vmem>>, vector<8x128xf32>,
    } else {
    }
    return
  }
  func.func @transform_0(%arg0: i32, %arg1: i32) -> (i32, i32) {
    %c0_i32 = arith.constant 0 : i32
    return %arg0, %arg1 : i32, i32
  }
  func.func @transform_1(%arg0: i32, %arg1: i32) -> (i32, i32) {
    %c0_i32 = arith.constant 0 : i32
    %c0_i32_0 = arith.constant 0 : i32
    return %arg1, %c0_i32 : i32, i32
  }
  func.func @transform_2(%arg0: i32, %arg1: i32) -> (i32, i32) {
    %c0_i32 = arith.constant 0 : i32
    %c0_i32_0 = arith.constant 0 : i32
    %c0_i32_1 = arith.constant 0 : i32
    return %c0_i32, %c0_i32_0 : i32, i32
  }
  func.func @transform_3(%arg0: i32, %arg1: i32) -> (i32, i32) {
    %c0_i32 = arith.constant 0 : i32
    %c0_i32_0 = arith.constant 0 : i32
    return %arg0, %c0_i32 : i32, i32
  }
}

</mosaic_0001>

<bundles_post_ra>
// kernel: tpu_custom_call.1
= control target key start
LH: loop header
LB: loop body
LE: loop exit
PB: predicated region body
PF: predicated region fallthrough
CT: control target
= control target key end

     0   :  { %8 = vsyncpa [#allocation4], 0  ;;  %s930_s0 = inlined_call_operand.hbm [shape: bf16[8,768], index: 0, kind: input, shape index: {}]   ;;  %s931_s1 = inlined_call_operand.hbm [shape: bf16[768,128], index: 1, kind: input, shape index: {}]   ;;  %s932_s2 = inlined_call_operand.vmem [shape: f32[1,128], index: 2, kind: input, shape index: {}]   ;;  %s933_s3 = inlined_call_operand.hbm [shape: f32[8,128], index: 3, kind: output, shape index: {}]  }
   0x1   :  { %9 = vsyncpa [#allocation7], 0 }
   0x2   :  { %10 = vsyncpa [#allocation5], 0  ;;  %s859_s12 = smov [#allocation3]   ;;  %s860_s14 = smov [#allocation6]  }
   0x3   :  { %s17_s13 = sshll.u32 %s859_s12, 4  ;;  %s26_s15 = sshll.u32 %s860_s14, 4  ;;  %s18_s13 = int_to_ptr.vmem [resolvable:$true] %s17_s13  ;;  %s884_s15 = int_to_ptr.vmem [resolvable:$true] %s26_s15 }
   0x4   :  { %s787_s18 = scalar_lea.hbm %s930_s0, 384 }
   0x5   :  { %p788_p0 = scmp.ne.s32.totalorder %s930_s0, %s787_s18  ;;  %p791_p1 = scmp.lt.u32.totalorder %s787_s18, %s930_s0 }
   0x7   :  { %p793_p2 = pnand %p791_p1, %p788_p0 }
   0x9   :  { %796 = shalt.err (!%p793_p2)
}
   0xa   :  { %s797_s23 = scalar_lea.vmem %s18_s13, 384  ;;  %p802_p4 = scmp.lt.s32.totalorder %s18_s13, %s18_s13 }
   0xb   :  { %p798_p3 = scmp.ne.s32.totalorder %s18_s13, %s797_s23  ;;  %p803_p5 = scmp.lt.s32.totalorder %s797_s23, %s797_s23 }
   0xd   :  { %p804_p6 = por %p803_p5, %p802_p4 }
   0xf   :  { %p805_p7 = pnand %p804_p6, %p798_p3 }
  0x11   :  { %808 = shalt.err (!%p805_p7)
}
  0x12   :  { %20 = dma.hbm_to_vmem [thread:$0]  %s930_s0, 384, %s18_s13, [#allocation4]  }
  0x13   :  { %s809_s28 = scalar_lea.hbm %s931_s1, 6144 }
  0x14   :  { %p810_p8 = scmp.ne.s32.totalorder %s931_s1, %s809_s28  ;;  %p813_p9 = scmp.lt.u32.totalorder %s809_s28, %s931_s1 }
  0x16   :  { %p815_p10 = pnand %p813_p9, %p810_p8 }
  0x18   :  { %818 = shalt.err (!%p815_p10)
}
  0x19   :  { %s819_s6 = scalar_lea.vmem %s884_s15, 6144  ;;  %p824_p12 = scmp.lt.s32.totalorder %s884_s15, %s884_s15 }
  0x1a   :  { %p820_p11 = scmp.ne.s32.totalorder %s884_s15, %s819_s6  ;;  %p825_p13 = scmp.lt.s32.totalorder %s819_s6, %s819_s6 }
  0x1c   :  { %p826_p0 = por %p825_p13, %p824_p12 }
  0x1e   :  { %p827_p1 = pnand %p826_p0, %p820_p11 }
  0x20   :  { %830 = shalt.err (!%p827_p1)
}
  0x21   :  { %s861_s0 = smov 64   ;;  %s862_s7 = smov 4  }
  0x22   :  { %32 = dma.hbm_to_vmem [thread:$0]  %s931_s1, 6144, %s884_s15, [#allocation7], %s861_s0, %s861_s0, %s862_s7  }
  0x23   :  { %853 = dma.done.wait [#allocation4], 384  }
  0x24   :  { %854 = vsyncadd [#allocation4], 4294966912 }
  0x25   :  { %855 = dma.done.wait [#allocation7], 6144  }
  0x26   :  { %856 = vsyncadd [#allocation7], 4294961152  ;;  %v733_v0 = vld [vmem:[#allocation6 + $0x40] sm:$0xff]   ;;  %v737_v4 = vld [vmem:[#allocation6 + $0x48] sm:$0xff]   ;;  %s863_s11 = smov [#allocation8]  }
  0x27   :  { %v734_v1 = vld [vmem:[#allocation6 + $0xc0] sm:$0xff]   ;;  %662 = vmatprep.subr.bf16.mxu0 %v733_v0  ;;  %v738_v5 = vld [vmem:[#allocation6 + $0xc8] sm:$0xff]   ;;  %v741_v8 = vld [vmem:[#allocation6 + $0x50] sm:$0xff]   ;;  %s597_s12 = sshll.u32 %s863_s11, 4  ;;  %s598_s12 = int_to_ptr.vmem [resolvable:$true] %s597_s12 }
  0x28   :  { %v735_v2 = vld [vmem:[#allocation6] sm:$0xff]   ;;  %684 = vmatprep.subr.bf16.mxu1 %v734_v1  ;;  %v739_v6 = vld [vmem:[#allocation6 + $0x8] sm:$0xff]   ;;  %v742_v9 = vld [vmem:[#allocation6 + $0xd0] sm:$0xff]   ;;  %s831_s13 = scalar_lea.vmem %s598_s12, 128  ;;  %p836_p3 = scmp.lt.s32.totalorder %s598_s12, %s598_s12 }
  0x29   :  { %v736_v3 = vld [vmem:[#allocation6 + $0x80] sm:$0xff]   ;;  %663 = vmatpush3.bf16.msra.mxu0 %v735_v2  ;;  %v740_v7 = vld [vmem:[#allocation6 + $0x88] sm:$0xff]   ;;  %v743_v10 = vld [vmem:[#allocation6 + $0x10] sm:$0xff]   ;;  %p832_p2 = scmp.ne.s32.totalorder %s598_s12, %s831_s13  ;;  %p837_p4 = scmp.lt.s32.totalorder %s831_s13, %s831_s13 }
  0x2a   :  { %685 = vmatpush3.bf16.msra.mxu1 %v736_v3  ;;  %664 = vmatprep.subr.bf16.mxu0 %v737_v4  ;;  %v744_v11 = vld [vmem:[#allocation6 + $0x90] sm:$0xff]   ;;  %v745_v12 = vld [vmem:[#allocation6 + $0x58] sm:$0xff]   ;;  %v749_v16 = vld [vmem:[#allocation6 + $0x60] sm:$0xff]  }
  0x2b   :  { %686 = vmatprep.subr.bf16.mxu1 %v738_v5  ;;  %v746_v13 = vld [vmem:[#allocation6 + $0xd8] sm:$0xff]   ;;  %v750_v17 = vld [vmem:[#allocation6 + $0xe0] sm:$0xff]   ;;  %v753_v20 = vld [vmem:[#allocation6 + $0x68] sm:$0xff]   ;;  %p838_p5 = por %p837_p4, %p836_p3 }
  0x2c   :  { %v747_v14 = vld [vmem:[#allocation6 + $0x18] sm:$0xff]   ;;  %v751_v18 = vld [vmem:[#allocation6 + $0x20] sm:$0xff]   ;;  %v754_v21 = vld [vmem:[#allocation6 + $0xe8] sm:$0xff]  }
  0x2d   :  { %665 = vmatpush3.bf16.msra.mxu0 %v739_v6  ;;  %v748_v15 = vld [vmem:[#allocation6 + $0x98] sm:$0xff]   ;;  %v752_v19 = vld [vmem:[#allocation6 + $0xa0] sm:$0xff]   ;;  %v755_v22 = vld [vmem:[#allocation6 + $0x28] sm:$0xff]   ;;  %p839_p6 = pnand %p838_p5, %p832_p2 }
  0x2e   :  { %687 = vmatpush3.bf16.msra.mxu1 %v740_v7  ;;  %666 = vmatprep.subr.bf16.mxu0 %v741_v8  ;;  %v756_v23 = vld [vmem:[#allocation6 + $0xa8] sm:$0xff]   ;;  %v757_v24 = vld [vmem:[#allocation6 + $0x70] sm:$0xff]   ;;  %v761_v28 = vld [vmem:[#allocation6 + $0x78] sm:$0xff]  }
  0x2f   :  { %688 = vmatprep.subr.bf16.mxu1 %v742_v9  ;;  %v758_v25 = vld [vmem:[#allocation6 + $0xf0] sm:$0xff]   ;;  %v762_v29 = vld [vmem:[#allocation6 + $0xf8] sm:$0xff]   ;;  %v48_v32 = vld [vmem:[#allocation3] sm:$0xff] }
  0x30   :  { %v759_v26 = vld [vmem:[#allocation6 + $0x30] sm:$0xff]   ;;  %v763_v30 = vld [vmem:[#allocation6 + $0x38] sm:$0xff]   ;;  %v607_v34 = vcombine.low %v48_v32, %v48_v32  ;;  %v608_v35 = vcombine.high %v48_v32, %v48_v32  ;;  %v769_v38 = vld [vmem:[#allocation6 + $0x140] sm:$0xff]  }
  0x31   :  { %667 = vmatpush3.bf16.msra.mxu0 %v743_v10  ;;  %v760_v27 = vld [vmem:[#allocation6 + $0xb0] sm:$0xff]   ;;  %v764_v31 = vld [vmem:[#allocation6 + $0xb8] sm:$0xff]   ;;  %v770_v39 = vld [vmem:[#allocation6 + $0x100] sm:$0xff]  }
  0x32   :  { %689 = vmatpush3.bf16.msra.mxu1 %v744_v11  ;;  %668 = vmatprep.subr.bf16.mxu0 %v745_v12  ;;  %v49_v33 = vld [vmem:[#allocation3 + $0x8] sm:$0xff]  ;;  %v771_v40 = vld [vmem:[#allocation6 + $0x148] sm:$0xff]   ;;  %v775_v44 = vld [vmem:[#allocation6 + $0x158] sm:$0xff]  }
  0x33   :  { %690 = vmatprep.subr.bf16.mxu1 %v746_v13  ;;  %v609_v36 = vcombine.low %v49_v33, %v49_v33  ;;  %v610_v37 = vcombine.high %v49_v33, %v49_v33  ;;  %488 = vmatprep.mubr.bf16.mxu0 %v608_v35  ;;  %v772_v41 = vld [vmem:[#allocation6 + $0x108] sm:$0xff]   ;;  %v773_v42 = vld [vmem:[#allocation6 + $0x150] sm:$0xff]   ;;  %v776_v45 = vld [vmem:[#allocation6 + $0x118] sm:$0xff]  }
  0x34   :  { %v774_v43 = vld [vmem:[#allocation6 + $0x110] sm:$0xff]   ;;  %v777_v46 = vld [vmem:[#allocation6 + $0x160] sm:$0xff]   ;;  %v50_v47 = vld [vmem:[#allocation3 + $0x10] sm:$0xff] }
  0x35   :  { %669 = vmatpush3.bf16.msra.mxu0 %v747_v14  ;;  %528 = vmatprep.mubr.bf16.mxu1 %v610_v37  ;;  %v612_v48 = vcombine.high %v50_v47, %v50_v47  ;;  %v778_v49 = vld [vmem:[#allocation6 + $0x120] sm:$0xff]   ;;  %v779_v50 = vld [vmem:[#allocation6 + $0x168] sm:$0xff]   ;;  %v781_v52 = vld [vmem:[#allocation6 + $0x170] sm:$0xff]   ;;  %v611_v56 = vcombine.low %v50_v47, %v50_v47 }
  0x36   :  { %691 = vmatpush3.bf16.msra.mxu1 %v748_v15  ;;  %670 = vmatprep.subr.bf16.mxu0 %v749_v16  ;;  %v780_v51 = vld [vmem:[#allocation6 + $0x128] sm:$0xff]   ;;  %v782_v53 = vld [vmem:[#allocation6 + $0x130] sm:$0xff]   ;;  %v783_v54 = vld [vmem:[#allocation6 + $0x178] sm:$0xff]  }
  0x37   :  { %692 = vmatprep.subr.bf16.mxu1 %v750_v17  ;;  %v784_v55 = vld [vmem:[#allocation6 + $0x138] sm:$0xff]   ;;  %v661_v9 = vld [vmem:[%s932_s2] ss:$0 sm:$0xff] }
  0x39   :  { %671 = vmatpush3.bf16.msra.mxu0 %v751_v18 }
  0x3a   :  { %693 = vmatpush3.bf16.msra.mxu1 %v752_v19  ;;  %672 = vmatprep.subr.bf16.mxu0 %v753_v20 }
  0x3b   :  { %694 = vmatprep.subr.bf16.mxu1 %v754_v21 }
  0x3d   :  { %673 = vmatpush3.bf16.msra.mxu0 %v755_v22 }
  0x3e   :  { %695 = vmatpush3.bf16.msra.mxu1 %v756_v23  ;;  %674 = vmatprep.subr.bf16.mxu0 %v757_v24 }
  0x3f   :  { %696 = vmatprep.subr.bf16.mxu1 %v758_v25 }
  0x41   :  { %675 = vmatpush3.bf16.msra.mxu0 %v759_v26 }
  0x42   :  { %697 = vmatpush3.bf16.msra.mxu1 %v760_v27  ;;  %676 = vmatprep.subr.bf16.mxu0 %v761_v28 }
  0x43   :  { %698 = vmatprep.subr.bf16.mxu1 %v762_v29 }
  0x45   :  { %677 = vmatpush3.bf16.msra.mxu0 %v763_v30 }
  0x46   :  { %699 = vmatpush3.bf16.msra.mxu1 %v764_v31  ;;  %706 = vmatprep.subr.bf16.mxu0 %v769_v38 }
  0x48   :  { %489 = vmatmul.mubr.bf16.vlgmr.msra.gmra.mrb[0].mxu0 %v607_v34 }
  0x49   :  { %529 = vmatmul.mubr.bf16.vlgmr.msra.gmra.mrb[0].mxu1 %v609_v36  ;;  %707 = vmatpush3.bf16.msra.mxu0 %v770_v39 }
  0x4a   :  { %708 = vmatprep.subr.bf16.mxu0 %v771_v40  ;;  %568 = vmatprep.mubr.bf16.mxu0 %v612_v48 }
  0x4d   :  { %709 = vmatpush3.bf16.msra.mxu0 %v772_v41 }
  0x4e   :  { %710 = vmatprep.subr.bf16.mxu0 %v773_v42 }
  0x51   :  { %711 = vmatpush3.bf16.msra.mxu0 %v774_v43 }
  0x52   :  { %712 = vmatprep.subr.bf16.mxu0 %v775_v44 }
  0x55   :  { %713 = vmatpush3.bf16.msra.mxu0 %v776_v45 }
  0x56   :  { %714 = vmatprep.subr.bf16.mxu0 %v777_v46 }
  0x59   :  { %715 = vmatpush3.bf16.msra.mxu0 %v778_v49 }
  0x5a   :  { %716 = vmatprep.subr.bf16.mxu0 %v779_v50 }
  0x5d   :  { %717 = vmatpush3.bf16.msra.mxu0 %v780_v51 }
  0x5e   :  { %718 = vmatprep.subr.bf16.mxu0 %v781_v52 }
  0x61   :  { %719 = vmatpush3.bf16.msra.mxu0 %v782_v53 }
  0x62   :  { %720 = vmatprep.subr.bf16.mxu0 %v783_v54 }
  0x65   :  { %721 = vmatpush3.bf16.msra.mxu0 %v784_v55 }
  0x68   :  { %569 = vmatmul.mubr.bf16.vlgmr.msra.gmra.mrb[4].mxu0 %v611_v56 }
 0x11b   :  { %v678_v57 = vpop.f32.mrb[0].mxu0 }
 0x11c   :  { %v700_v58 = vpop.f32.mrb[0].mxu1  ;;  %v679_v59 = vpop.f32.mrb[1].mxu0 }
 0x11d   :  { %v701_v60 = vpop.f32.mrb[1].mxu1  ;;  %v680_v61 = vadd.f32 %v679_v59, %v678_v57  ;;  %v681_v63 = vpop.f32.mrb[2].mxu0 }
 0x11e   :  { %v702_v62 = vadd.f32 %v701_v60, %v700_v58  ;;  %v703_v0 = vpop.f32.mrb[2].mxu1  ;;  %v682_v1 = vpop.f32.mrb[3].mxu0 }
 0x11f   :  { %v704_v2 = vpop.f32.mrb[3].mxu1 }
 0x120   :  { %v531_v3 = vadd.f32 %v702_v62, %v680_v61 }
 0x13b   :  { %v722_v4 = vpop.f32.mrb[4].mxu0 }
 0x13c   :  { %v723_v5 = vpop.f32.mrb[5].mxu0 }
 0x13d   :  { %v724_v6 = vadd.f32 %v723_v5, %v722_v4  ;;  %v725_v7 = vpop.f32.mrb[6].mxu0 }
 0x13e   :  { %v726_v8 = vpop.f32.mrb[7].mxu0 }
 0x13f   :  { %v571_v10 = vadd.f32 %v724_v6, %v531_v3 }
 0x141   :  { %v589_v11 = vadd.f32 %v661_v9, %v571_v10 }
 0x143   :  { %590 = vst [vmem:[#allocation8] sm:$0xff] %v589_v11 }
 0x144   :  { %842 = shalt.err (!%p839_p6)
}
 0x145   :  { %s843_s16 = scalar_lea.hbm %s933_s3, 128 }
 0x146   :  { %p844_p7 = scmp.ne.s32.totalorder %s933_s3, %s843_s16  ;;  %p847_p8 = scmp.lt.u32.totalorder %s843_s16, %s933_s3 }
 0x148   :  { %p849_p9 = pnand %p847_p8, %p844_p7 }
 0x14a   :  { %852 = shalt.err (!%p849_p9)
}
 0x14b   :  { %600 = dma.vmem_to_hbm [thread:$0]  %s598_s12, 128, %s933_s3, [#allocation5]  }
 0x14c   :  { %857 = dma.done.wait [#allocation5], 128  }
 0x14d   :  { %858 = vsyncadd [#allocation5], 4294967168 }
 0x14e   :  { %604 = vsyncpa [#allocation4], 1 }
 0x14f   :  { %605 = vsyncpa [#allocation7], 1 }
 0x150   :  { %606 = vsyncpa [#allocation5], 1 }

</bundles_post_ra>
